<compile_context>
chip_gen: v6e
topology: v6e:2x2x1
jax: 0.10.0
libtpu: 0.0.40
codegen_flags: <defaults>
</compile_context>

<pallas_src>
import jax
import jax.numpy as jnp
from jax import lax
from jax.experimental import pallas as pl
from jax.experimental.pallas import tpu as pltpu


_OUT_PAD = 8  # merged head output rows: [loc, coord_x, coord_y, 0, 0, 0, 0, 0]
_HW = None    # cached (max_token_tile, vmem_limit_bytes)


def _hw_params():
    """Per-generation token tile / VMEM limit (feedback: re-derive per chip)."""
    global _HW
    if _HW is None:
        kind = ""
        try:
            kind = jax.devices()[0].device_kind.lower()
        except Exception:
            pass
        if "v7" in kind:                      # 64 MiB physical VMEM -> keep headroom
            _HW = (1024, 48 * 1024 * 1024)
        else:                                 # v5e / v6e: 128 MiB physical VMEM
            _HW = (1024, 64 * 1024 * 1024)
    return _HW


def _token_tile(num_tokens, max_tile):
    """Lane tile over tokens: full extent if small, else max_tile; ragged tails are
    handled by cdiv grids + Pallas boundary blocks."""
    return max_tile if num_tokens >= max_tile else num_tokens


def _mosaic_params():
    _, vmem_limit = _hw_params()
    return pltpu.CompilerParams(
        dimension_semantics=("parallel", "parallel"),
        vmem_limit_bytes=vmem_limit,
    )


def _to_bf16(x):
    # Trace-time dtype check: zero-cost when the upstream extractor already emits bf16.
    return x if x.dtype == jnp.bfloat16 else x.astype(jnp.bfloat16)


# ----------------------------------------------------------------------------
# Pallas kernels (channel-major inputs: tokens on the lane axis)
# ----------------------------------------------------------------------------
def _proj_tokmajor_kernel(x_ref, w_ref, b_ref, o_ref):
    """grd 1x1 conv, token-major output.

    x_ref: (Cin, tn) bf16, w_ref: (Cin, D) bf16, b_ref: (1, D) fp32.
    Contract over Cin (dim 0 of both) -> (tn, D), D stays lane-dense, so no
    wrapper-side transpose of the big output is needed.
    """
    xb = _to_bf16(x_ref[...])
    y = lax.dot_general(xb, w_ref[...],
                        dimension_numbers=(((0,), (0,)), ((), ())),
                        preferred_element_type=jnp.float32)          # (tn, D)
    o_ref[...] = (y + b_ref[...]).astype(o_ref.dtype)


def _fused_sat_kernel(x_ref, wp_ref, w1_ref, w2l_ref, w2c_ref,
                      w3l_ref, w3c_ref, b_ref, o_ref):
    """Fused: sat 1x1 projection + location head + coordinator head.

    x_ref  : (Cin, tn) bf16
    wp_ref : (D, Cin)  bf16   projection weight (output-major)
    w1_ref : (2H, D)   bf16   stacked [w1_loc^T ; w1_coord^T]
    w2l/w2c: (H, H)    bf16
    w3l/w3c: (8, H)    bf16   zero-padded final-layer weights (rows 0 / 1..2)
    b_ref  : (D, 8)    fp32   packed biases: cols 0=proj 1=b1l 2=b1c 3=b2l 4=b2c,
                              col 5 rows 0..7 = merged layer-3 bias
    o_ref  : (8, tn)   fp32   row 0 -> location, rows 1..2 -> sigmoid(coordinates)
    """
    f32, bf16 = jnp.float32, jnp.bfloat16
    h = w2l_ref.shape[0]

    xb = _to_bf16(x_ref[...])                                         # (Cin, tn)

    # 1x1 projection (feature fusion output placeholder), stays in VMEM/vregs.
    proj = jnp.dot(wp_ref[...], xb, preferred_element_type=f32) + b_ref[:, 0:1]
    pb = proj.astype(bf16)                                            # (D, tn)

    # layer 1: single stacked matmul for both heads, then slice.
    h1 = jnp.dot(w1_ref[...], pb, preferred_element_type=f32)         # (2H, tn)
    h1l = jnp.maximum(h1[0:h] + b_ref[:, 1:2], 0.0).astype(bf16)
    h1c = jnp.maximum(h1[h:2 * h] + b_ref[:, 2:3], 0.0).astype(bf16)

    # layer 2: per head.
    h2l = jnp.maximum(
        jnp.dot(w2l_ref[...], h1l, preferred_element_type=f32) + b_ref[:, 3:4],
        0.0).astype(bf16)
    h2c = jnp.maximum(
        jnp.dot(w2c_ref[...], h1c, preferred_element_type=f32) + b_ref[:, 4:5],
        0.0).astype(bf16)

    # layer 3: merged lane-dense (8, tn) output slab.  Two small dots are kept
    # (an in-kernel concat of h2l/h2c along the contraction dim would add a ~1 MiB
    # VMEM copy per tile, more than the saved MXU pass overhead).
    y = (jnp.dot(w3l_ref[...], h2l, preferred_element_type=f32)
         + jnp.dot(w3c_ref[...], h2c, preferred_element_type=f32)
         + b_ref[0:_OUT_PAD, 5:6])

    # selective sigmoid: rows 1..2 are the coordinator head.
    row = lax.broadcasted_iota(jnp.int32, y.shape, 0)
    is_coord = jnp.logical_and(row >= 1, row <= 2)
    y = jnp.where(is_coord, jax.nn.sigmoid(y), y)

    o_ref[...] = y.astype(o_ref.dtype)


# ----------------------------------------------------------------------------
# pallas_call wrappers
# ----------------------------------------------------------------------------
def conv1x1_proj_tokmajor(x_cm, w_cm_bf16, b_row):
    """x_cm: (N, Cin, T) -> token-major projection (N, T, D) bf16 (no transpose)."""
    n, cin, t = x_cm.shape
    d = w_cm_bf16.shape[1]
    max_tile, _ = _hw_params()
    tn = _token_tile(t, max_tile)
    grid = (n, pl.cdiv(t, tn))
    return pl.pallas_call(
        _proj_tokmajor_kernel,
        out_shape=jax.ShapeDtypeStruct((n, t, d), jnp.bfloat16),
        grid_spec=pltpu.PrefetchScalarGridSpec(
            num_scalar_prefetch=0,
            grid=grid,
            in_specs=[
                pl.BlockSpec((None, cin, tn), lambda b, j: (b, 0, j)),
                pl.BlockSpec((cin, d), lambda b, j: (0, 0)),
                pl.BlockSpec((1, d), lambda b, j: (0, 0)),
            ],
            out_specs=pl.BlockSpec((None, tn, d), lambda b, j: (b, j, 0)),
        ),
        compiler_params=_mosaic_params(),
    )(x_cm, w_cm_bf16, b_row)


def fused_sat_proj_heads(x_cm, kp):
    """x_cm: (N, Cin, T) -> merged head output (N, OUT_PAD, T) fp32."""
    n, cin, t = x_cm.shape
    d = kp["sat_wT"].shape[0]
    h = kp["w2lT"].shape[0]
    max_tile, _ = _hw_params()
    tn = _token_tile(t, max_tile)
    grid = (n, pl.cdiv(t, tn))

    def ws(shape):  # grid-constant weight/bias block (constant index_map -> DMA'd once)
        return pl.BlockSpec(shape, lambda b, j: (0, 0))

    return pl.pallas_call(
        _fused_sat_kernel,
        out_shape=jax.ShapeDtypeStruct((n, _OUT_PAD, t), jnp.float32),
        grid_spec=pltpu.PrefetchScalarGridSpec(
            num_scalar_prefetch=0,
            grid=grid,
            in_specs=[
                pl.BlockSpec((None, cin, tn), lambda b, j: (b, 0, j)),  # x tile
                ws((d, cin)),           # projection weight
                ws((2 * h, d)),         # stacked layer-1 weight
                ws((h, h)), ws((h, h)),  # layer-2 weights (loc, coord)
                ws((_OUT_PAD, h)), ws((_OUT_PAD, h)),  # padded layer-3 weights
                ws((d, 8)),             # packed biases
            ],
            out_specs=pl.BlockSpec((None, _OUT_PAD, tn), lambda b, j: (b, 0, j)),
        ),
        compiler_params=_mosaic_params(),
    )(x_cm, kp["sat_wT"], kp["w1_stack"], kp["w2lT"], kp["w2cT"],
      kp["w3l_pad"], kp["w3c_pad"], kp["bias_pack"])


# ----------------------------------------------------------------------------
# Parameter construction / one-time kernel-side parameter prep
# ----------------------------------------------------------------------------
def xavier_uniform(key, fan_in, fan_out):
    bound = jnp.sqrt(6.0 / (fan_in + fan_out))
    return jax.random.uniform(key, (fan_in, fan_out), jnp.float32, -bound, bound)


def make_mlp_params(key, input_dim, hidden_dim, output_dim, num_layers=3):
    dims = [input_dim] + [hidden_dim] * (num_layers - 1) + [output_dim]
    params = []
    for li in range(num_layers):
        key, kw, kb = jax.random.split(key, 3)
        fan_in, fan_out = dims[li], dims[li + 1]
        w = xavier_uniform(kw, fan_in, fan_out)
        bb = 1.0 / jnp.sqrt(float(fan_in))
        b = jax.random.uniform(kb, (1, fan_out), jnp.float32, -bb, bb)
        params += [w, b]
    return tuple(params)


def prepare_kernel_params(params):
    """One-time prep (hoisted out of the forward): transpose to output-major, cast
    matmul weights to bf16, stack the layer-1 weights, zero-pad the layer-3 weights,
    and pack all bias columns into a single (D, 8) fp32 block."""
    bf16, f32 = jnp.bfloat16, jnp.float32
    sat_w, sat_b, grd_w, grd_b, loc_params, coord_params = params
    w1l, b1l, w2l, b2l, w3l, b3l = loc_params
    w1c, b1c, w2c, b2c, w3c, b3c = coord_params

    d = sat_w.shape[1]
    h = w1l.shape[1]
    # Invariants the fused kernel relies on.
    assert d == h, "bias packing assumes hidden_dim == d_model (true for CVSeqLocation)"
    assert w1l.shape[0] == d and w1c.shape[0] == d
    assert w3l.shape[1] == 1 and w3c.shape[1] == 2 and _OUT_PAD >= 3 and d >= _OUT_PAD

    # Packed biases: cols [proj, b1l, b1c, b2l, b2c, merged-b3 (rows 0..7), 0, 0].
    bias_pack = jnp.zeros((d, 8), f32)
    bias_pack = bias_pack.at[:, 0].set(sat_b[0].astype(f32))
    bias_pack = bias_pack.at[:, 1].set(b1l[0].astype(f32))
    bias_pack = bias_pack.at[:, 2].set(b1c[0].astype(f32))
    bias_pack = bias_pack.at[:, 3].set(b2l[0].astype(f32))
    bias_pack = bias_pack.at[:, 4].set(b2c[0].astype(f32))
    b3_merged = (jnp.zeros((_OUT_PAD,), f32)
                 .at[0:1].set(b3l[0].astype(f32))
                 .at[1:3].set(b3c[0].astype(f32)))
    bias_pack = bias_pack.at[0:_OUT_PAD, 5].set(b3_merged)

    # Zero-padded, merged-output final-layer weights (rows 3..7 stay exactly zero).
    w3l_pad = jnp.zeros((_OUT_PAD, h), f32).at[0:1, :].set(w3l.T)
    w3c_pad = jnp.zeros((_OUT_PAD, h), f32).at[1:3, :].set(w3c.T)

    return dict(
        sat_wT=sat_w.T.astype(bf16),                                  # (D, Cin)
        grd_w_cm=grd_w.astype(bf16),                                  # (Cin, D)
        grd_b=grd_b.astype(f32),                                      # (1, D)
        w1_stack=jnp.concatenate([w1l.T, w1c.T], axis=0).astype(bf16),  # (2H, D)
        w2lT=w2l.T.astype(bf16),
        w2cT=w2c.T.astype(bf16),
        w3l_pad=w3l_pad.astype(bf16),
        w3c_pad=w3c_pad.astype(bf16),
        bias_pack=bias_pack,
    )


# ----------------------------------------------------------------------------
# Full forward (grd_prev_feat=None branch)
# ----------------------------------------------------------------------------
def cv_seq_location_forward(sat_feats_nchw, grd_feats_nchw, kp):
    n, c, hs, ws = sat_feats_nchw.shape
    _, _, hg, wg = grd_feats_nchw.shape

    # NCHW -> (N, Cin, H*W): contiguous reshape only; tokens land on the lane axis.
    sat_x = sat_feats_nchw.reshape(n, c, hs * ws)
    grd_x = grd_feats_nchw.reshape(n, c, hg * wg)

    # Fused: sat 1x1 projection + both MLP heads (projection never touches HBM).
    head_out = fused_sat_proj_heads(sat_x, kp)                        # (N, 8, hs*ws)

    # grd 1x1 projection, emitted token-major + bf16 directly from the kernel.
    grd_prev = conv1x1_proj_tokmajor(grd_x, kp["grd_w_cm"], kp["grd_b"])  # (N, hg*wg, D)

    # Tiny epilogue transposes on the 1- / 2-row head outputs only.
    pred_location = jnp.transpose(head_out[:, 0:1, :], (0, 2, 1))     # (N, hs*ws, 1)
    coordinate_reg = jnp.transpose(head_out[:, 1:3, :], (0, 2, 1))    # (N, hs*ws, 2)
    return pred_location, coordinate_reg, grd_prev


# ----------------------------------------------------------------------------
# Plain-JAX fp32 reference (same placeholder semantics) for validation
# ----------------------------------------------------------------------------
def _reference_forward(sat, grd, params):
    sat_w, sat_b, grd_w, grd_b, loc_params, coord_params = params
    satf = sat.astype(jnp.float32)
    grdf = grd.astype(jnp.float32)
    n, c, hs, ws = satf.shape
    _, _, hg, wg = grdf.shape
    sat_tok = jnp.transpose(satf, (0, 2, 3, 1)).reshape(n, hs * ws, c)
    grd_tok = jnp.transpose(grdf, (0, 2, 3, 1)).reshape(n, hg * wg, c)
    sat_proj = sat_tok @ sat_w + sat_b
    grd_proj = grd_tok @ grd_w + grd_b

    def mlp(x, p):
        w1, b1, w2, b2, w3, b3 = p
        x = jax.nn.relu(x @ w1 + b1)
        x = jax.nn.relu(x @ w2 + b2)
        return x @ w3 + b3

    pred = mlp(sat_proj, loc_params)
    coord = jax.nn.sigmoid(mlp(sat_proj, coord_params))
    return pred, coord, grd_proj


# ----------------------------------------------------------------------------
if __name__ == "__main__":
    # Small stand-ins for 1024-channel resnet layer3 features / d_model=256.
    N, C_IN, H, W = 2, 64, 16, 16
    D_MODEL = 32

    key = jax.random.PRNGKey(0)
    k_sat, k_grd, k_sw, k_sb, k_gw, k_gb, k_loc, k_coord = jax.random.split(key, 8)

    # The (stand-in) feature extractors emit bf16 feature maps (NCHW).
    sat = jax.random.normal(k_sat, (N, C_IN, H, W), jnp.float32).astype(jnp.bfloat16)
    grd = jax.random.normal(k_grd, (N, C_IN, H, W), jnp.float32).astype(jnp.bfloat16)

    sat_w = xavier_uniform(k_sw, C_IN, D_MODEL)
    sat_b = jax.random.uniform(k_sb, (1, D_MODEL), jnp.float32, -0.01, 0.01)
    grd_w = xavier_uniform(k_gw, C_IN, D_MODEL)
    grd_b = jax.random.uniform(k_gb, (1, D_MODEL), jnp.float32, -0.01, 0.01)

    loc_params = make_mlp_params(k_loc, D_MODEL, D_MODEL, 1, num_layers=3)
    coord_params = make_mlp_params(k_coord, D_MODEL, D_MODEL, 2, num_layers=3)

    params = (sat_w, sat_b, grd_w, grd_b, loc_params, coord_params)
    kp = prepare_kernel_params(params)   # hoisted one-time prep

    fwd = jax.jit(cv_seq_location_forward)
    pred_location, coordinate_reg, grd_prev = fwd(sat, grd, kp)
    jax.block_until_ready((pred_location, coordinate_reg, grd_prev))

    # Shape / range checks.
    assert pred_location.shape == (N, H * W, 1)
    assert coordinate_reg.shape == (N, H * W, 2)
    assert grd_prev.shape == (N, H * W, D_MODEL)
    assert bool(jnp.all(coordinate_reg >= 0.0)) and bool(jnp.all(coordinate_reg <= 1.0))

    # Numerical check against the fp32 reference (loose tol covers bf16 MXU inputs,
    # bf16 inter-layer activations and the bf16 grd output).
    ref_pred, ref_coord, ref_grd = _reference_forward(sat, grd, params)
    assert float(jnp.max(jnp.abs(pred_location - ref_pred))) < 0.2
    assert float(jnp.max(jnp.abs(coordinate_reg - ref_coord))) < 0.2
    assert float(jnp.max(jnp.abs(grd_prev.astype(jnp.float32) - ref_grd))) < 0.2

    print("KERNEL_OK")
</pallas_src>

<mosaic_0001>
module attributes {stable_mosaic.version = 11 : i64} {
  func.func @_fused_sat_kernel(%arg0: i32, %arg1: i32, %arg2: memref<1x64x256xbf16, #tpu.memory_space<vmem>>, %arg3: memref<32x64xbf16, #tpu.memory_space<vmem>>, %arg4: memref<64x32xbf16, #tpu.memory_space<vmem>>, %arg5: memref<32x32xbf16, #tpu.memory_space<vmem>>, %arg6: memref<32x32xbf16, #tpu.memory_space<vmem>>, %arg7: memref<8x32xbf16, #tpu.memory_space<vmem>>, %arg8: memref<8x32xbf16, #tpu.memory_space<vmem>>, %arg9: memref<32x8xf32, #tpu.memory_space<vmem>>, %arg10: memref<1x8x256xf32, #tpu.memory_space<vmem>>) attributes {dimension_semantics = [#tpu.dimension_semantics<parallel>, #tpu.dimension_semantics<parallel>], iteration_bounds = array<i64: 2, 1>, scalar_prefetch = 0 : i64, scratch_operands = 0 : i64, tpu.core_type = #tpu.core_type<tc>, window_params = [{transform_indices = @transform_0, window_bounds = array<i64: 1, 64, 256>}, {pipeline_mode = #tpu.pipeline_mode<synchronous>, transform_indices = @transform_1, window_bounds = array<i64: 32, 64>}, {pipeline_mode = #tpu.pipeline_mode<synchronous>, transform_indices = @transform_2, window_bounds = array<i64: 64, 32>}, {pipeline_mode = #tpu.pipeline_mode<synchronous>, transform_indices = @transform_3, window_bounds = array<i64: 32, 32>}, {pipeline_mode = #tpu.pipeline_mode<synchronous>, transform_indices = @transform_4, window_bounds = array<i64: 32, 32>}, {pipeline_mode = #tpu.pipeline_mode<synchronous>, transform_indices = @transform_5, window_bounds = array<i64: 8, 32>}, {pipeline_mode = #tpu.pipeline_mode<synchronous>, transform_indices = @transform_6, window_bounds = array<i64: 8, 32>}, {pipeline_mode = #tpu.pipeline_mode<synchronous>, transform_indices = @transform_7, window_bounds = array<i64: 32, 8>}, {transform_indices = @transform_8, window_bounds = array<i64: 1, 8, 256>}]} {
    %c0 = arith.constant 0 : index
    %c0_0 = arith.constant 0 : index
    %c0_1 = arith.constant 0 : index
    %0 = vector.load %arg2[%c0, %c0_0, %c0_1] : memref<1x64x256xbf16, #tpu.memory_space<vmem>>, vector<1x64x256xbf16>
    %1 = vector.shape_cast %0 : vector<1x64x256xbf16> to vector<64x256xbf16>
    %c0_2 = arith.constant 0 : index
    %c0_3 = arith.constant 0 : index
    %2 = vector.load %arg3[%c0_2, %c0_3] : memref<32x64xbf16, #tpu.memory_space<vmem>>, vector<32x64xbf16>
    %cst = arith.constant dense<0.000000e+00> : vector<32x256xf32>
    %3 = tpu.matmul %2, %1, %cst {dimension_numbers = #tpu.dot_dimension_numbers<[1], [0], [0], [1], [0, 0, 1, 1], [], []>} : vector<32x64xbf16>, vector<64x256xbf16>, vector<32x256xf32> -> vector<32x256xf32>
    %c0_4 = arith.constant 0 : index
    %c0_5 = arith.constant 0 : index
    %4 = vector.load %arg9[%c0_4, %c0_5] : memref<32x8xf32, #tpu.memory_space<vmem>>, vector<32x1xf32>
    %5 = vector.broadcast %4 : vector<32x1xf32> to vector<32x256xf32>
    %6 = arith.addf %3, %5 : vector<32x256xf32>
    %7 = arith.truncf %6 : vector<32x256xf32> to vector<32x256xbf16>
    %c0_6 = arith.constant 0 : index
    %c0_7 = arith.constant 0 : index
    %8 = vector.load %arg4[%c0_6, %c0_7] : memref<64x32xbf16, #tpu.memory_space<vmem>>, vector<64x32xbf16>
    %cst_8 = arith.constant dense<0.000000e+00> : vector<64x256xf32>
    %9 = tpu.matmul %8, %7, %cst_8 {dimension_numbers = #tpu.dot_dimension_numbers<[1], [0], [0], [1], [0, 0, 1, 1], [], []>} : vector<64x32xbf16>, vector<32x256xbf16>, vector<64x256xf32> -> vector<64x256xf32>
    %10 = vector.extract_strided_slice %9 {offsets = [0, 0], sizes = [32, 256], strides = [1, 1]} : vector<64x256xf32> to vector<32x256xf32>
    %c0_9 = arith.constant 0 : index
    %c1 = arith.constant 1 : index
    %11 = vector.load %arg9[%c0_9, %c1] : memref<32x8xf32, #tpu.memory_space<vmem>>, vector<32x1xf32>
    %12 = vector.broadcast %11 : vector<32x1xf32> to vector<32x256xf32>
    %13 = arith.addf %10, %12 : vector<32x256xf32>
    %cst_10 = arith.constant 0.000000e+00 : f32
    %14 = vector.broadcast %cst_10 : f32 to vector<32x256xf32>
    %15 = arith.maximumf %13, %14 : vector<32x256xf32>
    %16 = arith.truncf %15 : vector<32x256xf32> to vector<32x256xbf16>
    %17 = vector.extract_strided_slice %9 {offsets = [32, 0], sizes = [32, 256], strides = [1, 1]} : vector<64x256xf32> to vector<32x256xf32>
    %c0_11 = arith.constant 0 : index
    %c2 = arith.constant 2 : index
    %18 = vector.load %arg9[%c0_11, %c2] : memref<32x8xf32, #tpu.memory_space<vmem>>, vector<32x1xf32>
    %19 = vector.broadcast %18 : vector<32x1xf32> to vector<32x256xf32>
    %20 = arith.addf %17, %19 : vector<32x256xf32>
    %cst_12 = arith.constant 0.000000e+00 : f32
    %21 = vector.broadcast %cst_12 : f32 to vector<32x256xf32>
    %22 = arith.maximumf %20, %21 : vector<32x256xf32>
    %23 = arith.truncf %22 : vector<32x256xf32> to vector<32x256xbf16>
    %c0_13 = arith.constant 0 : index
    %c0_14 = arith.constant 0 : index
    %24 = vector.load %arg5[%c0_13, %c0_14] : memref<32x32xbf16, #tpu.memory_space<vmem>>, vector<32x32xbf16>
    %cst_15 = arith.constant dense<0.000000e+00> : vector<32x256xf32>
    %25 = tpu.matmul %24, %16, %cst_15 {dimension_numbers = #tpu.dot_dimension_numbers<[1], [0], [0], [1], [0, 0, 1, 1], [], []>} : vector<32x32xbf16>, vector<32x256xbf16>, vector<32x256xf32> -> vector<32x256xf32>
    %c0_16 = arith.constant 0 : index
    %c3 = arith.constant 3 : index
    %26 = vector.load %arg9[%c0_16, %c3] : memref<32x8xf32, #tpu.memory_space<vmem>>, vector<32x1xf32>
    %27 = vector.broadcast %26 : vector<32x1xf32> to vector<32x256xf32>
    %28 = arith.addf %25, %27 : vector<32x256xf32>
    %cst_17 = arith.constant 0.000000e+00 : f32
    %29 = vector.broadcast %cst_17 : f32 to vector<32x256xf32>
    %30 = arith.maximumf %28, %29 : vector<32x256xf32>
    %31 = arith.truncf %30 : vector<32x256xf32> to vector<32x256xbf16>
    %c0_18 = arith.constant 0 : index
    %c0_19 = arith.constant 0 : index
    %32 = vector.load %arg6[%c0_18, %c0_19] : memref<32x32xbf16, #tpu.memory_space<vmem>>, vector<32x32xbf16>
    %cst_20 = arith.constant dense<0.000000e+00> : vector<32x256xf32>
    %33 = tpu.matmul %32, %23, %cst_20 {dimension_numbers = #tpu.dot_dimension_numbers<[1], [0], [0], [1], [0, 0, 1, 1], [], []>} : vector<32x32xbf16>, vector<32x256xbf16>, vector<32x256xf32> -> vector<32x256xf32>
    %c0_21 = arith.constant 0 : index
    %c4 = arith.constant 4 : index
    %34 = vector.load %arg9[%c0_21, %c4] : memref<32x8xf32, #tpu.memory_space<vmem>>, vector<32x1xf32>
    %35 = vector.broadcast %34 : vector<32x1xf32> to vector<32x256xf32>
    %36 = arith.addf %33, %35 : vector<32x256xf32>
    %cst_22 = arith.constant 0.000000e+00 : f32
    %37 = vector.broadcast %cst_22 : f32 to vector<32x256xf32>
    %38 = arith.maximumf %36, %37 : vector<32x256xf32>
    %39 = arith.truncf %38 : vector<32x256xf32> to vector<32x256xbf16>
    %c0_23 = arith.constant 0 : index
    %c0_24 = arith.constant 0 : index
    %40 = vector.load %arg7[%c0_23, %c0_24] : memref<8x32xbf16, #tpu.memory_space<vmem>>, vector<8x32xbf16>
    %cst_25 = arith.constant dense<0.000000e+00> : vector<8x256xf32>
    %41 = tpu.matmul %40, %31, %cst_25 {dimension_numbers = #tpu.dot_dimension_numbers<[1], [0], [0], [1], [0, 0, 1, 1], [], []>} : vector<8x32xbf16>, vector<32x256xbf16>, vector<8x256xf32> -> vector<8x256xf32>
    %c0_26 = arith.constant 0 : index
    %c0_27 = arith.constant 0 : index
    %42 = vector.load %arg8[%c0_26, %c0_27] : memref<8x32xbf16, #tpu.memory_space<vmem>>, vector<8x32xbf16>
    %cst_28 = arith.constant dense<0.000000e+00> : vector<8x256xf32>
    %43 = tpu.matmul %42, %39, %cst_28 {dimension_numbers = #tpu.dot_dimension_numbers<[1], [0], [0], [1], [0, 0, 1, 1], [], []>} : vector<8x32xbf16>, vector<32x256xbf16>, vector<8x256xf32> -> vector<8x256xf32>
    %44 = arith.addf %41, %43 : vector<8x256xf32>
    %c0_29 = arith.constant 0 : index
    %c5 = arith.constant 5 : index
    %45 = vector.load %arg9[%c0_29, %c5] : memref<32x8xf32, #tpu.memory_space<vmem>>, vector<8x1xf32>
    %46 = vector.broadcast %45 : vector<8x1xf32> to vector<8x256xf32>
    %47 = arith.addf %44, %46 : vector<8x256xf32>
    %48 = tpu.iota {dimensions = array<i32: 0>} : vector<8x256xi32>
    %c1_i32 = arith.constant 1 : i32
    %49 = vector.broadcast %c1_i32 : i32 to vector<8x256xi32>
    %50 = arith.cmpi sge, %48, %49 : vector<8x256xi32>
    %c2_i32 = arith.constant 2 : i32
    %51 = vector.broadcast %c2_i32 : i32 to vector<8x256xi32>
    %52 = arith.cmpi sle, %48, %51 : vector<8x256xi32>
    %53 = arith.andi %50, %52 : vector<8x256xi1>
    %54 = arith.negf %47 : vector<8x256xf32>
    %55 = math.exp %54 : vector<8x256xf32>
    %cst_30 = arith.constant 1.000000e+00 : f32
    %56 = vector.broadcast %cst_30 : f32 to vector<8x256xf32>
    %57 = arith.addf %56, %55 : vector<8x256xf32>
    %58 = arith.divf %56, %57 : vector<8x256xf32>
    %59 = arith.select %53, %58, %47 : vector<8x256xi1>, vector<8x256xf32>
    %c0_31 = arith.constant 0 : index
    %c0_32 = arith.constant 0 : index
    %c0_33 = arith.constant 0 : index
    %60 = vector.load %arg10[%c0_31, %c0_32, %c0_33] : memref<1x8x256xf32, #tpu.memory_space<vmem>>, vector<1x8x256xf32>
    %61 = vector.shape_cast %60 : vector<1x8x256xf32> to vector<8x256xf32>
    %62 = vector.shape_cast %59 : vector<8x256xf32> to vector<1x8x256xf32>
    tpu.vector_store %arg10[%c0_31, %c0_32, %c0_33], %62 {strides = array<i32>} : memref<1x8x256xf32, #tpu.memory_space<vmem>>, vector<1x8x256xf32>,
    return
  }
  func.func @transform_0(%arg0: i32, %arg1: i32) -> (i32, i32, i32) {
    %c0_i32 = arith.constant 0 : i32
    %c0_i32_0 = arith.constant 0 : i32
    return %arg0, %c0_i32, %arg1 : i32, i32, i32
  }
  func.func @transform_1(%arg0: i32, %arg1: i32) -> (i32, i32) {
    %c0_i32 = arith.constant 0 : i32
    %c0_i32_0 = arith.constant 0 : i32
    %c0_i32_1 = arith.constant 0 : i32
    return %c0_i32, %c0_i32_0 : i32, i32
  }
  func.func @transform_2(%arg0: i32, %arg1: i32) -> (i32, i32) {
    %c0_i32 = arith.constant 0 : i32
    %c0_i32_0 = arith.constant 0 : i32
    %c0_i32_1 = arith.constant 0 : i32
    return %c0_i32, %c0_i32_0 : i32, i32
  }
  func.func @transform_3(%arg0: i32, %arg1: i32) -> (i32, i32) {
    %c0_i32 = arith.constant 0 : i32
    %c0_i32_0 = arith.constant 0 : i32
    %c0_i32_1 = arith.constant 0 : i32
    return %c0_i32, %c0_i32_0 : i32, i32
  }
  func.func @transform_4(%arg0: i32, %arg1: i32) -> (i32, i32) {
    %c0_i32 = arith.constant 0 : i32
    %c0_i32_0 = arith.constant 0 : i32
    %c0_i32_1 = arith.constant 0 : i32
    return %c0_i32, %c0_i32_0 : i32, i32
  }
  func.func @transform_5(%arg0: i32, %arg1: i32) -> (i32, i32) {
    %c0_i32 = arith.constant 0 : i32
    %c0_i32_0 = arith.constant 0 : i32
    %c0_i32_1 = arith.constant 0 : i32
    return %c0_i32, %c0_i32_0 : i32, i32
  }
  func.func @transform_6(%arg0: i32, %arg1: i32) -> (i32, i32) {
    %c0_i32 = arith.constant 0 : i32
    %c0_i32_0 = arith.constant 0 : i32
    %c0_i32_1 = arith.constant 0 : i32
    return %c0_i32, %c0_i32_0 : i32, i32
  }
  func.func @transform_7(%arg0: i32, %arg1: i32) -> (i32, i32) {
    %c0_i32 = arith.constant 0 : i32
    %c0_i32_0 = arith.constant 0 : i32
    %c0_i32_1 = arith.constant 0 : i32
    return %c0_i32, %c0_i32_0 : i32, i32
  }
  func.func @transform_8(%arg0: i32, %arg1: i32) -> (i32, i32, i32) {
    %c0_i32 = arith.constant 0 : i32
    %c0_i32_0 = arith.constant 0 : i32
    return %arg0, %c0_i32, %arg1 : i32, i32, i32
  }
}

module attributes {stable_mosaic.version = 11 : i64} {
  func.func @_proj_tokmajor_kernel(%arg0: i32, %arg1: i32, %arg2: memref<1x64x256xbf16, #tpu.memory_space<vmem>>, %arg3: memref<64x32xbf16, #tpu.memory_space<vmem>>, %arg4: memref<1x32xf32, #tpu.memory_space<vmem>>, %arg5: memref<1x256x32xbf16, #tpu.memory_space<vmem>>) attributes {dimension_semantics = [#tpu.dimension_semantics<parallel>, #tpu.dimension_semantics<parallel>], iteration_bounds = array<i64: 2, 1>, scalar_prefetch = 0 : i64, scratch_operands = 0 : i64, tpu.core_type = #tpu.core_type<tc>, window_params = [{transform_indices = @transform_0, window_bounds = array<i64: 1, 64, 256>}, {pipeline_mode = #tpu.pipeline_mode<synchronous>, transform_indices = @transform_1, window_bounds = array<i64: 64, 32>}, {pipeline_mode = #tpu.pipeline_mode<synchronous>, transform_indices = @transform_2, window_bounds = array<i64: 1, 32>}, {transform_indices = @transform_3, window_bounds = array<i64: 1, 256, 32>}]} {
    %c0 = arith.constant 0 : index
    %c0_0 = arith.constant 0 : index
    %c0_1 = arith.constant 0 : index
    %0 = vector.load %arg2[%c0, %c0_0, %c0_1] : memref<1x64x256xbf16, #tpu.memory_space<vmem>>, vector<1x64x256xbf16>
    %1 = vector.shape_cast %0 : vector<1x64x256xbf16> to vector<64x256xbf16>
    %c0_2 = arith.constant 0 : index
    %c0_3 = arith.constant 0 : index
    %2 = vector.load %arg3[%c0_2, %c0_3] : memref<64x32xbf16, #tpu.memory_space<vmem>>, vector<64x32xbf16>
    %cst = arith.constant dense<0.000000e+00> : vector<256x32xf32>
    %3 = tpu.matmul %1, %2, %cst {dimension_numbers = #tpu.dot_dimension_numbers<[0], [0], [1], [1], [0, 1, 1, 1], [], []>} : vector<64x256xbf16>, vector<64x32xbf16>, vector<256x32xf32> -> vector<256x32xf32>
    %c0_4 = arith.constant 0 : index
    %c0_5 = arith.constant 0 : index
    %4 = vector.load %arg4[%c0_4, %c0_5] : memref<1x32xf32, #tpu.memory_space<vmem>>, vector<1x32xf32>
    %5 = vector.broadcast %4 : vector<1x32xf32> to vector<256x32xf32>
    %6 = arith.addf %3, %5 : vector<256x32xf32>
    %7 = arith.truncf %6 : vector<256x32xf32> to vector<256x32xbf16>
    %c0_6 = arith.constant 0 : index
    %c0_7 = arith.constant 0 : index
    %c0_8 = arith.constant 0 : index
    %8 = vector.load %arg5[%c0_6, %c0_7, %c0_8] : memref<1x256x32xbf16, #tpu.memory_space<vmem>>, vector<1x256x32xbf16>
    %9 = vector.shape_cast %8 : vector<1x256x32xbf16> to vector<256x32xbf16>
    %10 = vector.shape_cast %7 : vector<256x32xbf16> to vector<1x256x32xbf16>
    tpu.vector_store %arg5[%c0_6, %c0_7, %c0_8], %10 {strides = array<i32>} : memref<1x256x32xbf16, #tpu.memory_space<vmem>>, vector<1x256x32xbf16>,
    return
  }
  func.func @transform_0(%arg0: i32, %arg1: i32) -> (i32, i32, i32) {
    %c0_i32 = arith.constant 0 : i32
    %c0_i32_0 = arith.constant 0 : i32
    return %arg0, %c0_i32, %arg1 : i32, i32, i32
  }
  func.func @transform_1(%arg0: i32, %arg1: i32) -> (i32, i32) {
    %c0_i32 = arith.constant 0 : i32
    %c0_i32_0 = arith.constant 0 : i32
    %c0_i32_1 = arith.constant 0 : i32
    return %c0_i32, %c0_i32_0 : i32, i32
  }
  func.func @transform_2(%arg0: i32, %arg1: i32) -> (i32, i32) {
    %c0_i32 = arith.constant 0 : i32
    %c0_i32_0 = arith.constant 0 : i32
    %c0_i32_1 = arith.constant 0 : i32
    return %c0_i32, %c0_i32_0 : i32, i32
  }
  func.func @transform_3(%arg0: i32, %arg1: i32) -> (i32, i32, i32) {
    %c0_i32 = arith.constant 0 : i32
    %c0_i32_0 = arith.constant 0 : i32
    return %arg0, %arg1, %c0_i32 : i32, i32, i32
  }
}

</mosaic_0001>

<bundles_post_ra>
// kernel: cv_seq_location_forward.2
= control target key start
LH: loop header
LB: loop body
LE: loop exit
PB: predicated region body
PF: predicated region fallthrough
CT: control target
= control target key end

     0   :  { %s1281_s27 = smov 0   ;;  %s1283_s28 = smov 0   ;;  %s1419_s0 = inlined_call_operand.vmem [shape: bf16[2,64,256], index: 0, kind: input, shape index: {}]   ;;  %s1420_s1 = inlined_call_operand.vmem [shape: bf16[32,64], index: 1, kind: input, shape index: {}]   ;;  %s1421_s2 = inlined_call_operand.vmem [shape: bf16[64,32], index: 2, kind: input, shape index: {}]   ;;  %s1422_s3 = inlined_call_operand.vmem [shape: bf16[32,32], index: 3, kind: input, shape index: {}]   ;;  %s1423_s4 = inlined_call_operand.vmem [shape: bf16[32,32], index: 4, kind: input, shape index: {}]   ;;  %s1424_s5 = inlined_call_operand.vmem [shape: bf16[8,32], index: 5, kind: input, shape index: {}]   ;;  %s1425_s6 = inlined_call_operand.vmem [shape: bf16[8,32], index: 6, kind: input, shape index: {}]   ;;  %s1426_s7 = inlined_call_operand.vmem [shape: f32[32,8], index: 7, kind: input, shape index: {}]   ;;  %s1427_s8 = inlined_call_operand.vmem [shape: f32[2,8,256], index: 8, kind: output, shape index: {}]  }
   0x1   :  { %s1285_s29 = smov 0  }
   0x2 LB: > { %s30_s30 = sadd.s32 1, %s1224_s28  ;;  %p1094_p0 = scmp.ge.s32.totalorder %s1228_s29, 1  ;;  %s1228_s29 = sphi %s1285_s29, %s18_s29   ;;  %s1224_s28 = sphi %s1283_s28, %s1429_s28   ;;  %s1220_s27 = sphi %s1281_s27, %s1428_s27  }
   0x3   : > { %p32_p1 = scmp.ge.s32.totalorder %s30_s30, 2  ;;  %p283_p2 = scmp.lt.s32.totalorder %s1228_s29, 3 }
   0x5   : > { %s1431_s30 = smov (%p32_p1, %s30_s30), 0  ;;  %p284_p3 = pnand %p1094_p0, %p283_p2 }
   0x6   : > { %p326_p4 = scmp.lt.s32.totalorder (!%p284_p3), %s1220_s27, 1 }
   0x7   : > { %287 = sbr.rel (%p284_p3) target bundleno = 950 (0x3b6), region = 52 }
   0xc   : > { %v1230_v0 = vmov 0   ;;  %s1433_s27 = smov (!%p326_p4, %s1220_s27), 1  ;;  %v1306_v1 = vld [vmem:[%s1426_s7] sm:$0xff]  ;;  %v1314_v2 = vld [vmem:[%s1426_s7 + $0x8] sm:$0xff]  ;;  %v1319_v3 = vld [vmem:[%s1426_s7 + $0x10] sm:$0xff]  ;;  %vm432_vm0 = vcmask 523264  }
   0xd   : > { %471 = vmatprep.mubr.bf16.mxu0 %v1230_v0  ;;  %1166 = vset.pattern.permute.xlu1 %v1230_v0  ;;  %s1133_s15 = sshll.u32 %s1433_s27, 6  ;;  %v1326_v4 = vld [vmem:[%s1426_s7 + $0x18] sm:$0xff]  ;;  %v1188_v13 = vld [vmem:[%s1420_s1] sm:$0xff]   ;;  %v1189_v14 = vld [vmem:[%s1420_s1 + $0x8] sm:$0xff]   ;;  %v1231_v15 = vmov 2   ;;  %v1232_v16 = vmov 1  }
   0xe   : > { %1165 = vset.pattern.permute.xlu0 %v1230_v0  ;;  %569 = vmatprep.mubr.bf16.mxu1 %v1230_v0  ;;  %s333_s20 = scalar_lea.vmem %s1419_s0, %s1133_s15  ;;  %v1190_v41 = vld [vmem:[%s1421_s2] sm:$0xff]   ;;  %vm524_vm1 = vcmask 261120   ;;  %v1191_v42 = vld [vmem:[%s1421_s2 + $0x8] sm:$0xff]   ;;  %v1192_v43 = vld [vmem:[%s1421_s2 + $0x10] sm:$0xff]   ;;  %v1233_v45 = vmov 4   ;;  %v1234_v46 = vmov 3  }
   0xf   : > { %364 = vperm.xlu1 %1166, %v1306_v1   ;;  %374 = vperm.xlu0 %1165, %v1319_v3   ;;  %v1176_v5 = vld [vmem:[%s333_s20 + $0x34] ss:$8 sps:$4 sm:$0xff]   ;;  %v1178_v6 = vld [vmem:[%s333_s20 + $0x30] ss:$8 sps:$4 sm:$0xff]   ;;  %v1179_v7 = vld [vmem:[%s333_s20 + $0x24] ss:$8 sps:$4 sm:$0xff]  }
  0x10   : > { %447 = vmatprep.subr.bf16.mxu0 %v1176_v5  ;;  %v1181_v8 = vld [vmem:[%s333_s20 + $0x20] ss:$8 sps:$4 sm:$0xff]   ;;  %v1182_v9 = vld [vmem:[%s333_s20 + $0x14] ss:$8 sps:$4 sm:$0xff]   ;;  %v1184_v10 = vld [vmem:[%s333_s20 + $0x10] ss:$8 sps:$4 sm:$0xff]  }
  0x11   : > { %448 = vmatpush1.bf16.msra.mxu0 %v1178_v6  ;;  %v1185_v11 = vld [vmem:[%s333_s20 + $0x4] ss:$8 sps:$4 sm:$0xff]   ;;  %v1187_v12 = vld [vmem:[%s333_s20] ss:$8 sps:$4 sm:$0xff]   ;;  %v1193_v44 = vld [vmem:[%s1421_s2 + $0x18] sm:$0xff]   ;;  %s1134_s9 = sshll.u32 %s1433_s27, 4 }
  0x12   : > { %449 = vmatprep.subr.bf16.mxu0 %v1179_v7  ;;  %s343_s12 = scalar_lea.vmem %s1427_s8, %s1134_s9 }
  0x13   : > { %369 = vperm.xlu1 %1166, %v1314_v2   ;;  %379 = vperm.xlu0 %1165, %v1326_v4  }
  0x15   : > { %450 = vmatpush1.bf16.msra.mxu0 %v1181_v8 }
  0x16   : > { %451 = vmatprep.subr.bf16.mxu0 %v1182_v9 }
  0x17   : > { %1168 = vset.pattern.permute.xlu1 %v1231_v15  ;;  %1167 = vset.pattern.permute.xlu0 %v1231_v15 }
  0x18   : > { %659 = vperm.xlu1 %1168, %v1326_v4   ;;  %655 = vperm.xlu0 %1167, %v1319_v3  }
  0x19   : > { %452 = vmatpush1.bf16.msra.mxu0 %v1184_v10 }
  0x1a   : > { %453 = vmatprep.subr.bf16.mxu0 %v1185_v11 }
  0x1c   : > { %647 = vperm.xlu1 %1168, %v1306_v1   ;;  %651 = vperm.xlu0 %1167, %v1314_v2  }
  0x1d   : > { %454 = vmatpush1.bf16.msra.mxu0 %v1187_v12 }
  0x20   : > { %1109 = vmatmul.mubr.msk.bf16.vlgmr.msra.gmra.mxu0 %vm432_vm0, %v1188_v13  ;;  %1169 = vset.pattern.permute.xlu1 %v1232_v16 }
  0x21   : > { %481 = vmatprep.mubr.bf16.mxu0 %v1230_v0  ;;  %1170 = vset.pattern.permute.xlu0 %v1232_v16 }
  0x22   : > { %619 = vperm.xlu1 %1169, %v1319_v3   ;;  %623 = vperm.xlu0 %1170, %v1326_v4  }
  0x26   : > { %611 = vperm.xlu1 %1169, %v1306_v1   ;;  %1171 = vset.pattern.permute.xlu0 %v1233_v45 }
  0x27   : > { %796 = vperm.xlu0 %1171, %v1319_v3  }
  0x28   : > { %1110 = vmatmul.mubr.msk.bf16.gmra.mxu0 %vm432_vm0, %v1189_v14 }
  0x29   : > { %750 = vmatprep.mubr.bf16.mxu0 %v1230_v0 }
  0x2a   : > { %615 = vperm.xlu1 %1169, %v1314_v2  }
  0x2b   : > { %792 = vperm.xlu0 %1171, %v1314_v2  }
  0x2e   : > { %1172 = vset.pattern.permute.xlu1 %v1233_v45 }
  0x2f   : > { %800 = vperm.xlu1 %1172, %v1326_v4   ;;  %1174 = vset.pattern.permute.xlu0 %v1234_v46 }
  0x30   : > { %699 = vperm.xlu0 %1174, %v1326_v4  }
  0x33   : > { %788 = vperm.xlu1 %1172, %v1306_v1  }
  0x37   : > { %1173 = vset.pattern.permute.xlu1 %v1234_v46 }
  0x38   : > { %695 = vperm.xlu1 %1173, %v1319_v3  }
  0x3c   : > { %687 = vperm.xlu1 %1173, %v1306_v1  }
  0x40   : > { %691 = vperm.xlu1 %1173, %v1314_v2  }
  0x8a   : > { %v375_v21 = vpop.permute.xlu0 %374  ;;  %v365_v22 = vpop.permute.xlu1 %364 }
  0x8e   : > { %v380_v26 = vpop.permute.xlu0 %379  ;;  %v370_v27 = vpop.permute.xlu1 %369 }
  0x93   : > { %v660_v47 = vpop.permute.xlu1 %659  ;;  %v656_v49 = vpop.permute.xlu0 %655 }
  0x97   : > { %v648_v48 = vpop.permute.xlu1 %647  ;;  %v652_v54 = vpop.permute.xlu0 %651 }
  0x9d   : > { %v620_v50 = vpop.permute.xlu1 %619  ;;  %v624_v59 = vpop.permute.xlu0 %623 }
  0xa1   : > { %v612_v55 = vpop.permute.xlu1 %611 }
  0xa5   : > { %v616_v60 = vpop.permute.xlu1 %615 }
  0xe0   : > { %v473_v17 = vpop.f32.mrf.mxu0 }
  0xe1   : > { %v474_v39 = vadd.f32 %v473_v17, %v365_v22 }
  0xe2   : > { %v475_v18 = vpop.f32.mrf.mxu0 }
  0xe3   : > { %v476_v34 = vadd.f32 %v475_v18, %v365_v22 }
  0xe4   : > { %v477_v19 = vpop.f32.mrf.mxu0 }
  0xe5   : > { %v478_v36 = vadd.f32 %v477_v19, %v370_v27 }
  0xe6   : > { %v479_v20 = vpop.f32.mrf.mxu0 }
  0xe7   : > { %v480_v30 = vadd.f32 %v479_v20, %v370_v27  ;;  %v492_v40 = vpack.c.bf16 %v478_v36, %v474_v39 }
  0xe8   : > { %v483_v23 = vpop.f32.mrf.mxu0 }
  0xe9   : > { %v484_v33 = vadd.f32 %v483_v23, %v375_v21  ;;  %v493_v38 = vpack.c.bf16 %v480_v30, %v476_v34 }
  0xea   : > { %v485_v24 = vpop.f32.mrf.mxu0 }
  0xeb   : > { %v486_v31 = vadd.f32 %v485_v24, %v375_v21 }
  0xec   : > { %v487_v25 = vpop.f32.mrf.mxu0 }
  0xed   : > { %v488_v28 = vadd.f32 %v487_v25, %v380_v26 }
  0xee   : > { %v489_v29 = vpop.f32.mrf.mxu0 }
  0xef   : > { %v490_v32 = vadd.f32 %v489_v29, %v380_v26  ;;  %v494_v37 = vpack.c.bf16 %v488_v28, %v484_v33  ;;  %v1195_v26 = vld [vmem:[%s1422_s3] sm:$0xff]  }
  0xf1   : > { %v495_v35 = vpack.c.bf16 %v490_v32, %v486_v31 }
  0xf3   : > { %549 = vmatprep.subr.bf16.mxu1 %v495_v35 }
  0xf4   : > { %550 = vmatpush1.bf16.msra.mxu1 %v494_v37 }
  0xf5   : > { %551 = vmatprep.subr.bf16.mxu1 %v493_v38 }
  0xf8   : > { %552 = vmatpush1.bf16.msra.mxu1 %v492_v40 }
  0xfb   : > { %1115 = vmatmul.mubr.msk.bf16.vlgmr.msra.gmra.mxu1 %vm524_vm1, %v1190_v41  ;;  %v1197_v41 = vld [vmem:[%s1422_s3 + $0x8] sm:$0xff]  }
  0xfc   : > { %579 = vmatprep.mubr.bf16.mxu1 %v1230_v0 }
 0x103   : > { %1116 = vmatmul.mubr.msk.bf16.gmra.mxu1 %vm524_vm1, %v1191_v42 }
 0x104   : > { %589 = vmatprep.mubr.bf16.mxu1 %v1230_v0 }
 0x10b   : > { %1117 = vmatmul.mubr.msk.bf16.gmra.mxu1 %vm524_vm1, %v1192_v43 }
 0x10c   : > { %599 = vmatprep.mubr.bf16.mxu1 %v1230_v0 }
 0x113   : > { %1118 = vmatmul.mubr.msk.bf16.gmra.mxu1 %vm524_vm1, %v1193_v44 }
 0x114   : > { %851 = vmatprep.mubr.bf16.mxu1 %v1230_v0 }
 0x1bb   : > { %v571_v51 = vpop.f32.mrf.mxu1 }
 0x1bc   : > { %v626_v13 = vadd.f32 %v612_v55, %v571_v51 }
 0x1bd   : > { %v573_v52 = vpop.f32.mrf.mxu1 }
 0x1be   : > { %v627_v5 = vadd.f32 %v612_v55, %v573_v52  ;;  %v634_v22 = vmax.f32 %v626_v13, 0.0  ;;  %v1194_v52 = vld [vmem:[%s1423_s4] sm:$0xff]  }
 0x1bf   : > { %v575_v53 = vpop.f32.mrf.mxu1 }
 0x1c0   : > { %v628_v7 = vadd.f32 %v616_v60, %v575_v53  ;;  %v635_v16 = vmax.f32 %v627_v5, 0.0  ;;  %v1235_v53 = vmov 5  }
 0x1c1   : > { %v577_v56 = vpop.f32.mrf.mxu1  ;;  %1175 = vset.pattern.permute.xlu0 %v1235_v53 }
 0x1c2   : > { %v629_v62 = vadd.f32 %v616_v60, %v577_v56  ;;  %v636_v18 = vmax.f32 %v628_v7, 0.0  ;;  %977 = vperm.xlu0 %1175, %v1306_v1   ;;  %v801_v56 = vpop.permute.xlu1 %800 }
 0x1c3   : > { %v581_v57 = vpop.f32.mrf.mxu1 }
 0x1c4   : > { %v630_v4 = vadd.f32 %v620_v50, %v581_v57  ;;  %v637_v10 = vmax.f32 %v629_v62, 0.0  ;;  %v642_v24 = vpack.c.bf16 %v636_v18, %v634_v22 }
 0x1c5   : > { %v583_v58 = vpop.f32.mrf.mxu1 }
 0x1c6   : > { %v631_v63 = vadd.f32 %v620_v50, %v583_v58  ;;  %v638_v14 = vmax.f32 %v630_v4, 0.0  ;;  %v643_v21 = vpack.c.bf16 %v637_v10, %v635_v16 }
 0x1c7   : > { %v585_v61 = vpop.f32.mrf.mxu1 }
 0x1c8   : > { %v632_v3 = vadd.f32 %v624_v59, %v585_v61  ;;  %v639_v11 = vmax.f32 %v631_v63, 0.0  ;;  %v797_v63 = vpop.permute.xlu0 %796 }
 0x1c9   : > { %v587_v2 = vpop.f32.mrf.mxu1 }
 0x1ca   : > { %v633_v6 = vadd.f32 %v624_v59, %v587_v2  ;;  %v640_v8 = vmax.f32 %v632_v3, 0.0  ;;  %v789_v59 = vpop.permute.xlu1 %788 }
 0x1cb   : > { %v591_v9 = vpop.f32.mrf.mxu1 }
 0x1cc   : > { %v641_v12 = vmax.f32 %v633_v6, 0.0  ;;  %v644_v19 = vpack.c.bf16 %v640_v8, %v638_v14  ;;  %v662_v42 = vadd.f32 %v648_v48, %v591_v9  ;;  %v793_v7 = vpop.permute.xlu0 %792 }
 0x1cd   : > { %v593_v15 = vpop.f32.mrf.mxu1 }
 0x1ce   : > { %v645_v17 = vpack.c.bf16 %v641_v12, %v639_v11  ;;  %v663_v34 = vadd.f32 %v648_v48, %v593_v15  ;;  %v1196_v48 = vld [vmem:[%s1423_s4 + $0x8] sm:$0xff]   ;;  %v696_v4 = vpop.permute.xlu1 %695 }
 0x1cf   : > { %v595_v20 = vpop.f32.mrf.mxu1 }
 0x1d0   : > { %730 = vmatprep.subr.bf16.mxu0 %v645_v17  ;;  %v664_v36 = vadd.f32 %v652_v54, %v595_v20  ;;  %v671_v44 = vmax.f32 %v663_v34, 0.0  ;;  %v700_v14 = vpop.permute.xlu0 %699 }
 0x1d1   : > { %v597_v23 = vpop.f32.mrf.mxu1  ;;  %731 = vmatpush1.bf16.msra.mxu0 %v644_v19 }
 0x1d2   : > { %732 = vmatprep.subr.bf16.mxu0 %v643_v21  ;;  %v665_v29 = vadd.f32 %v652_v54, %v597_v23  ;;  %v672_v46 = vmax.f32 %v664_v36, 0.0  ;;  %v688_v1 = vpop.permute.xlu1 %687 }
 0x1d3   : > { %v601_v25 = vpop.f32.mrf.mxu1 }
 0x1d4   : > { %v666_v32 = vadd.f32 %v656_v49, %v601_v25  ;;  %v673_v38 = vmax.f32 %v665_v29, 0.0 }
 0x1d5   : > { %v603_v27 = vpop.f32.mrf.mxu1  ;;  %733 = vmatpush1.bf16.msra.mxu0 %v642_v24 }
 0x1d6   : > { %v667_v30 = vadd.f32 %v656_v49, %v603_v27  ;;  %v674_v43 = vmax.f32 %v666_v32, 0.0  ;;  %v679_v50 = vpack.c.bf16 %v673_v38, %v671_v44  ;;  %v692_v29 = vpop.permute.xlu1 %691 }
 0x1d7   : > { %v605_v28 = vpop.f32.mrf.mxu1 }
 0x1d8   : > { %v668_v31 = vadd.f32 %v660_v47, %v605_v28  ;;  %1121 = vmatmul.mubr.msk.bf16.vlgmr.msra.gmra.mxu0 %vm524_vm1, %v1195_v26  ;;  %v675_v39 = vmax.f32 %v667_v30, 0.0 }
 0x1d9   : > { %v607_v33 = vpop.f32.mrf.mxu1  ;;  %760 = vmatprep.mubr.bf16.mxu0 %v1230_v0 }
 0x1da   : > { %v669_v35 = vadd.f32 %v660_v47, %v607_v33  ;;  %v676_v37 = vmax.f32 %v668_v31, 0.0  ;;  %v670_v47 = vmax.f32 %v662_v42, 0.0 }
 0x1dc   : > { %v677_v40 = vmax.f32 %v669_v35, 0.0  ;;  %v680_v49 = vpack.c.bf16 %v676_v37, %v674_v43  ;;  %v678_v51 = vpack.c.bf16 %v672_v46, %v670_v47 }
 0x1de   : > { %v681_v45 = vpack.c.bf16 %v677_v40, %v675_v39 }
 0x1e0   : > { %831 = vmatprep.subr.bf16.mxu1 %v681_v45  ;;  %1122 = vmatmul.mubr.msk.bf16.gmra.mxu0 %vm524_vm1, %v1197_v41 }
 0x1e1   : > { %832 = vmatpush1.bf16.msra.mxu1 %v680_v49  ;;  %921 = vmatprep.mubr.bf16.mxu0 %v1230_v0 }
 0x1e2   : > { %833 = vmatprep.subr.bf16.mxu1 %v679_v50 }
 0x1e5   : > { %834 = vmatpush1.bf16.msra.mxu1 %v678_v51  ;;  %v885_v51 = vld [vmem:[%s1425_s6] sm:$0xf] }
 0x1e8   : > { %1125 = vmatmul.mubr.msk.bf16.vlgmr.msra.gmra.mxu1 %vm524_vm1, %v1194_v52 }
 0x1e9   : > { %861 = vmatprep.mubr.bf16.mxu1 %v1230_v0 }
 0x1f0   : > { %1126 = vmatmul.mubr.msk.bf16.gmra.mxu1 %vm524_vm1, %v1196_v48 }
 0x298   : > { %v752_v54 = vpop.f32.mrf.mxu0 }
 0x299   : > { %v753_v42 = vadd.f32 %v752_v54, %v688_v1 }
 0x29a   : > { %v754_v55 = vpop.f32.mrf.mxu0 }
 0x29b   : > { %v755_v32 = vadd.f32 %v754_v55, %v688_v1  ;;  %v771_v48 = vmax.f32 %v753_v42, 0.0 }
 0x29c   : > { %v756_v57 = vpop.f32.mrf.mxu0 }
 0x29d   : > { %v757_v46 = vadd.f32 %v756_v57, %v692_v29  ;;  %v772_v49 = vmax.f32 %v755_v32, 0.0 }
 0x29e   : > { %v758_v58 = vpop.f32.mrf.mxu0 }
 0x29f   : > { %v759_v40 = vadd.f32 %v758_v58, %v692_v29  ;;  %v773_v53 = vmax.f32 %v757_v46, 0.0 }
 0x2a0   : > { %v762_v62 = vpop.f32.mrf.mxu0 }
 0x2a1   : > { %v763_v35 = vadd.f32 %v762_v62, %v696_v4  ;;  %v774_v47 = vmax.f32 %v759_v40, 0.0  ;;  %v779_v54 = vpack.c.bf16 %v773_v53, %v771_v48  ;;  %v978_v62 = vpop.permute.xlu0 %977 }
 0x2a2   : > { %v764_v5 = vpop.f32.mrf.mxu0 }
 0x2a3   : > { %v765_v22 = vadd.f32 %v764_v5, %v696_v4  ;;  %v775_v44 = vmax.f32 %v763_v35, 0.0  ;;  %v780_v55 = vpack.c.bf16 %v774_v47, %v772_v49 }
 0x2a4   : > { %v766_v9 = vpop.f32.mrf.mxu0 }
 0x2a5   : > { %v767_v36 = vadd.f32 %v766_v9, %v700_v14  ;;  %v776_v37 = vmax.f32 %v765_v22, 0.0 }
 0x2a6   : > { %v768_v17 = vpop.f32.mrf.mxu0 }
 0x2a7   : > { %v769_v26 = vadd.f32 %v768_v17, %v700_v14  ;;  %v777_v45 = vmax.f32 %v767_v36, 0.0 }
 0x2a8   : > { %v853_v60 = vpop.f32.mrf.mxu1 }
 0x2a9   : > { %v854_v28 = vadd.f32 %v853_v60, %v789_v59  ;;  %v778_v38 = vmax.f32 %v769_v26, 0.0  ;;  %v781_v52 = vpack.c.bf16 %v777_v45, %v775_v44 }
 0x2aa   : > { %v855_v61 = vpop.f32.mrf.mxu1 }
 0x2ab   : > { %v856_v18 = vadd.f32 %v855_v61, %v789_v59  ;;  %v872_v41 = vmax.f32 %v854_v28, 0.0  ;;  %v782_v50 = vpack.c.bf16 %v778_v38, %v776_v37 }
 0x2ac   : > { %v857_v3 = vpop.f32.mrf.mxu1 }
 0x2ad   : > { %v858_v21 = vadd.f32 %v857_v3, %v793_v7  ;;  %v873_v30 = vmax.f32 %v856_v18, 0.0 }
 0x2ae   : > { %v859_v2 = vpop.f32.mrf.mxu1 }
 0x2af   : > { %v860_v13 = vadd.f32 %v859_v2, %v793_v7  ;;  %v874_v34 = vmax.f32 %v858_v21, 0.0 }
 0x2b0   : > { %v863_v6 = vpop.f32.mrf.mxu1 }
 0x2b1   : > { %v864_v15 = vadd.f32 %v863_v6, %v797_v63  ;;  %v875_v25 = vmax.f32 %v860_v13, 0.0  ;;  %v880_v43 = vpack.c.bf16 %v874_v34, %v872_v41 }
 0x2b2   : > { %v865_v8 = vpop.f32.mrf.mxu1 }
 0x2b3   : > { %v866_v11 = vadd.f32 %v865_v8, %v797_v63  ;;  %v876_v27 = vmax.f32 %v864_v15, 0.0  ;;  %v881_v39 = vpack.c.bf16 %v875_v25, %v873_v30 }
 0x2b4   : > { %v867_v10 = vpop.f32.mrf.mxu1 }
 0x2b5   : > { %v868_v12 = vadd.f32 %v867_v10, %v801_v56  ;;  %v877_v23 = vmax.f32 %v866_v11, 0.0  ;;  %v982_v11 = vlaneseq }
 0x2b6   : > { %v869_v16 = vpop.f32.mrf.mxu1 }
 0x2b7   : > { %v870_v19 = vadd.f32 %v869_v16, %v801_v56  ;;  %v878_v20 = vmax.f32 %v868_v12, 0.0  ;;  %v884_v56 = vld [vmem:[%s1424_s5] sm:$0xf]  ;;  %v983_v13 = vshrl.u32 %v982_v11, 7 }
 0x2b9   : > { %v879_v24 = vmax.f32 %v870_v19, 0.0  ;;  %v882_v33 = vpack.c.bf16 %v878_v20, %v876_v27  ;;  %vm984_vm2 = vcmp.ge.s32.totalorder %v983_v13, 1  ;;  %vm985_vm3 = vcmp.le.s32.totalorder %v983_v13, 2 }
 0x2ba   : > { %vm986_vm4 = vmand %vm984_vm2, %vm985_vm3 }
 0x2bb   : > { %v883_v31 = vpack.c.bf16 %v879_v24, %v877_v23 }
 0x2bd   : > { %901 = vmatprep.subr.bf16.mxu0 %v883_v31 }
 0x2be   : > { %902 = vmatpush1.bf16.msra.mxu0 %v882_v33 }
 0x2bf   : > { %903 = vmatprep.subr.bf16.mxu0 %v881_v39 }
 0x2c2   : > { %904 = vmatpush1.bf16.msra.mxu0 %v880_v43 }
 0x2c3   : > { %945 = vmatprep.subr.bf16.mxu0 %v782_v50 }
 0x2c5   : > { %1127 = vmatmul.mubr.msk.bf16.vlgmr.msra.gmra.mxu0 %vm524_vm1, %v885_v51 }
 0x2c6   : > { %946 = vmatpush1.bf16.msra.mxu0 %v781_v52  ;;  %965 = vmatprep.mubr.bf16.mxu0 %v1230_v0 }
 0x2c7   : > { %947 = vmatprep.subr.bf16.mxu0 %v780_v55 }
 0x2ca   : > { %948 = vmatpush1.bf16.msra.mxu0 %v779_v54 }
 0x2cd   : > { %1128 = vmatmul.mubr.msk.bf16.vlgmr.msra.gmra.mxu0 %vm524_vm1, %v884_v56 }
 0x385   : > { %v923_v57 = vpop.f32.mrf.mxu0 }
 0x387   : > { %v925_v58 = vpop.f32.mrf.mxu0 }
 0x389   : > { %v927_v59 = vpop.f32.mrf.mxu0 }
 0x38b   : > { %v928_v60 = vpop.f32.mrf.mxu0 }
 0x38d   : > { %v967_v61 = vpop.f32.mrf.mxu0 }
 0x38e   : > { %v968_v63 = vadd.f32 %v967_v61, %v923_v57 }
 0x38f   : > { %v969_v3 = vpop.f32.mrf.mxu0 }
 0x390   : > { %v980_v4 = vadd.f32 %v978_v62, %v968_v63  ;;  %v970_v2 = vadd.f32 %v969_v3, %v925_v58 }
 0x391   : > { %v971_v0 = vpop.f32.mrf.mxu0 }
 0x392   : > { %v1129_v5 = vmul.f32 -1.442695, %v980_v4  ;;  %v981_v6 = vadd.f32 %v978_v62, %v970_v2 }
 0x393   : > { %v972_v7 = vpop.f32.mrf.mxu0 }
 0x394   : > { %1198 = vpow2.f32 %v1129_v5  ;;  %v1130_v8 = vmul.f32 -1.442695, %v981_v6 }
 0x396   : > { %1200 = vpow2.f32 %v1130_v8 }
 0x3a1   : > { %v1199_v9 = vpop.eup %1198 }
 0x3a2   : > { %v993_v10 = vadd.f32 1.0, %v1199_v9 }
 0x3a3   : > { %v1201_v1 = vpop.eup %1200 }
 0x3a4   : > { %1202 = vrcp.f32 %v993_v10  ;;  %v994_v12 = vadd.f32 1.0, %v1201_v1 }
 0x3a6   : > { %1204 = vrcp.f32 %v994_v12 }
 0x3b1   : > { %v1203_v14 = vpop.eup %1202 }
 0x3b2   : > { %v999_v15 = vsel %vm986_vm4, %v1203_v14, %v980_v4 }
 0x3b3   : > { %v1205_v16 = vpop.eup %1204  ;;  %1001 = vst [vmem:[%s343_s12] sm:$0xff] %v999_v15 }
 0x3b4   : > { %v1000_v17 = vsel %vm986_vm4, %v1205_v16, %v981_v6 }
 0x3b5   : > { %1002 = vst [vmem:[%s343_s12 + $0x8] sm:$0xff] %v1000_v17 }
 0x3b6 PF: > { %s18_s29 = sadd.s32 1, %s1228_s29   ;;  %s1428_s27 = smov %s1224_s28 }
 0x3b7   : > { %p15_p5 = scmp.ge.s32.totalorder %s18_s29, 4   ;;  %s1429_s28 = smov %s1431_s30 }
 0x3b9   :  { %17 = sbr.rel (!%p15_p5) target bundleno = 2 (0x2), region = 82 }

// kernel: cv_seq_location_forward.3
= control target key start
LH: loop header
LB: loop body
LE: loop exit
PB: predicated region body
PF: predicated region fallthrough
CT: control target
= control target key end

     0   :  { %s1047_s12 = smov 0   ;;  %s1049_s13 = smov 0   ;;  %s1215_s0 = inlined_call_operand.vmem [shape: bf16[2,64,256], index: 0, kind: input, shape index: {}]   ;;  %s1216_s1 = inlined_call_operand.vmem [shape: bf16[64,32], index: 1, kind: input, shape index: {}]   ;;  %s1217_s2 = inlined_call_operand.vmem [shape: f32[1,32], index: 2, kind: input, shape index: {}]   ;;  %s1218_s3 = inlined_call_operand.vmem [shape: bf16[2,256,32], index: 3, kind: output, shape index: {}]  }
   0x1   :  { %s1051_s14 = smov 0  }
   0x2 LB: > { %s25_s15 = sadd.s32 1, %s1021_s13  ;;  %p792_p0 = scmp.ge.s32.totalorder %s1025_s14, 1  ;;  %s1025_s14 = sphi %s1051_s14, %s13_s14   ;;  %s1021_s13 = sphi %s1049_s13, %s1220_s13   ;;  %s1017_s12 = sphi %s1047_s12, %s1219_s12  }
   0x3   : > { %p27_p1 = scmp.ge.s32.totalorder %s25_s15, 2  ;;  %p158_p2 = scmp.lt.s32.totalorder %s1025_s14, 3 }
   0x5   : > { %s1222_s15 = smov (%p27_p1, %s25_s15), 0  ;;  %p159_p3 = pnand %p792_p0, %p158_p2 }
   0x6   : > { %p191_p4 = scmp.lt.s32.totalorder (!%p159_p3), %s1017_s12, 1 }
   0x7   : > { %162 = sbr.rel (%p159_p3) target bundleno = 347 (0x15b), region = 32 }
   0xc   : > { %v999_v0 = vld [vmem:[%s1216_s1 + $0x18] sm:$0xff]   ;;  %s1224_s12 = smov (!%p191_p4, %s1017_s12), 1  ;;  %v1000_v1 = vld [vmem:[%s1216_s1 + $0x10] sm:$0xff]   ;;  %v1001_v2 = vld [vmem:[%s1216_s1 + $0x8] sm:$0xff]   ;;  %vm330_vm0 = vcmask 523264   ;;  %vm668_vm1 = vcmask 257024  }
   0xd   : > { %914 = vmatprep.subr.bf16.mxu0 %v999_v0  ;;  %954 = vmatprep.subr.bf16.mxu1 %v999_v0  ;;  %s860_s20 = sshll.u32 %s1224_s12, 6  ;;  %v1002_v7 = vld [vmem:[%s1216_s1] sm:$0xff]   ;;  %s861_s30 = sshll.u32 %s1224_s12, 7 }
   0xe   : > { %915 = vmatpush3.bf16.msra.mxu0 %v999_v0  ;;  %958 = vmatpush3.bf16.msra.mxu1 %v999_v0  ;;  %s198_s23 = scalar_lea.vmem %s1215_s0, %s860_s20  ;;  %v1102_v28 = vld [vmem:[%s1217_s2] ss:$0 sm:$0xff]  ;;  %s1109_s6 = scalar_lea.vmem %s1218_s3, %s861_s30 }
   0xf   : > { %916 = vmatprep.subr.bf16.mxu0 %v1000_v1  ;;  %955 = vmatprep.subr.bf16.mxu1 %v1000_v1  ;;  %v987_v3 = vld [vmem:[%s198_s23 + $0x4] ss:$8 sps:$4 sm:$0xff]   ;;  %v989_v4 = vld [vmem:[%s198_s23] ss:$8 sps:$4 sm:$0xff]   ;;  %v990_v5 = vld [vmem:[%s198_s23 + $0x14] ss:$8 sps:$4 sm:$0xff]  }
  0x10   : > { %290 = vxpose.xlu1.c.b16.start [1/4] (short) %v987_v3, 128  ;;  %274 = vxpose.xlu0.c.b16.start [1/4] (short) %v989_v4, 128  ;;  %v992_v6 = vld [vmem:[%s198_s23 + $0x10] ss:$8 sps:$4 sm:$0xff]   ;;  %v993_v8 = vld [vmem:[%s198_s23 + $0x24] ss:$8 sps:$4 sm:$0xff]   ;;  %v995_v9 = vld [vmem:[%s198_s23 + $0x20] ss:$8 sps:$4 sm:$0xff]  }
  0x11   : > { %v996_v10 = vld [vmem:[%s198_s23 + $0x34] ss:$8 sps:$4 sm:$0xff]   ;;  %v998_v11 = vld [vmem:[%s198_s23 + $0x30] ss:$8 sps:$4 sm:$0xff]  }
  0x12   : > { %917 = vmatpush3.bf16.msra.mxu0 %v1000_v1  ;;  %959 = vmatpush3.bf16.msra.mxu1 %v1000_v1 }
  0x13   : > { %918 = vmatprep.subr.bf16.mxu0 %v1001_v2  ;;  %956 = vmatprep.subr.bf16.mxu1 %v1001_v2 }
  0x14   : > { %291 = vxpose.xlu1.c.b16.cont [2/4] (short) %v990_v5, 128  ;;  %275 = vxpose.xlu0.c.b16.cont [2/4] (short) %v992_v6, 128 }
  0x16   : > { %919 = vmatpush3.bf16.msra.mxu0 %v1001_v2  ;;  %960 = vmatpush3.bf16.msra.mxu1 %v1001_v2 }
  0x17   : > { %920 = vmatprep.subr.bf16.mxu0 %v1002_v7  ;;  %957 = vmatprep.subr.bf16.mxu1 %v1002_v7 }
  0x18   : > { %292 = vxpose.xlu1.c.b16.cont [3/4] (short) %v993_v8, 128  ;;  %276 = vxpose.xlu0.c.b16.cont [3/4] (short) %v995_v9, 128 }
  0x1a   : > { %921 = vmatpush3.bf16.msra.mxu0 %v1002_v7  ;;  %961 = vmatpush3.bf16.msra.mxu1 %v1002_v7 }
  0x1c   : > { %293 = vxpose.xlu1.c.b16.end [4/4] (short) %v996_v10, 128  ;;  %277 = vxpose.xlu0.c.b16.end [4/4] (short) %v998_v11, 128 }
  0x72   : > { %v298_v12 = vpop.trf.xlu1  ;;  %v282_v13 = vpop.trf.xlu0 }
  0x73   : > { %938 = vmatprep.mubr.msk.bf16.mxu1 %vm330_vm0, %v298_v12  ;;  %922 = vmatprep.mubr.msk.bf16.mxu0 %vm330_vm0, %v282_v13 }
  0x76   : > { %v299_v14 = vpop.trf.xlu1  ;;  %v283_v15 = vpop.trf.xlu0 }
  0x77   : > { %939 = vmatmul.mubr.msk.bf16.vlgmr.msra.gmra.mxu1 %vm330_vm0, %v299_v14  ;;  %923 = vmatmul.mubr.msk.bf16.vlgmr.msra.gmra.mxu0 %vm330_vm0, %v283_v15 }
  0x7a   : > { %v300_v16 = vpop.trf.xlu1  ;;  %v284_v17 = vpop.trf.xlu0 }
  0x7b   : > { %942 = vmatprep.mubr.msk.bf16.mxu1 %vm330_vm0, %v300_v16  ;;  %926 = vmatprep.mubr.msk.bf16.mxu0 %vm330_vm0, %v284_v17 }
  0x7e   : > { %v301_v18 = vpop.trf.xlu1  ;;  %v285_v19 = vpop.trf.xlu0 }
  0x7f   : > { %943 = vmatmul.mubr.msk.bf16.gmra.mxu1 %vm330_vm0, %v301_v18  ;;  %927 = vmatmul.mubr.msk.bf16.gmra.mxu0 %vm330_vm0, %v285_v19 }
  0x82   : > { %v302_v20 = vpop.trf.xlu1  ;;  %v286_v21 = vpop.trf.xlu0 }
  0x83   : > { %946 = vmatprep.mubr.msk.bf16.mxu1 %vm330_vm0, %v302_v20  ;;  %930 = vmatprep.mubr.msk.bf16.mxu0 %vm330_vm0, %v286_v21 }
  0x86   : > { %v303_v22 = vpop.trf.xlu1  ;;  %v287_v23 = vpop.trf.xlu0 }
  0x87   : > { %947 = vmatmul.mubr.msk.bf16.gmra.mxu1 %vm330_vm0, %v303_v22  ;;  %931 = vmatmul.mubr.msk.bf16.gmra.mxu0 %vm330_vm0, %v287_v23 }
  0x8a   : > { %v304_v24 = vpop.trf.xlu1  ;;  %v288_v25 = vpop.trf.xlu0 }
  0x8b   : > { %950 = vmatprep.mubr.msk.bf16.mxu1 %vm330_vm0, %v304_v24  ;;  %934 = vmatprep.mubr.msk.bf16.mxu0 %vm330_vm0, %v288_v25 }
  0x8e   : > { %v305_v26 = vpop.trf.xlu1  ;;  %v289_v27 = vpop.trf.xlu0 }
  0x8f   : > { %951 = vmatmul.mubr.msk.bf16.gmra.mxu1 %vm330_vm0, %v305_v26  ;;  %935 = vmatmul.mubr.msk.bf16.gmra.mxu0 %vm330_vm0, %v289_v27 }
 0x137   : > { %v940_v29 = vpop.f32.mrf.mxu1  ;;  %v924_v30 = vpop.f32.mrf.mxu0 }
 0x138   : > { %v486_v31 = vadd.f32 %v940_v29, %v1102_v28  ;;  %v422_v32 = vadd.f32 %v924_v30, %v1102_v28 }
 0x139   : > { %v477_v33 = vpop.f32.mrf.mxu1  ;;  %v413_v35 = vpop.f32.mrf.mxu0 }
 0x13a   : > { %v880_v34 = vpack.c.bf16 %v486_v31, %v486_v31  ;;  %v478_v36 = vadd.f32 %v1102_v28, %v477_v33  ;;  %v864_v37 = vpack.c.bf16 %v422_v32, %v422_v32  ;;  %v414_v38 = vadd.f32 %v1102_v28, %v413_v35 }
 0x13b   : > { %v941_v39 = vpop.f32.mrf.mxu1  ;;  %v925_v41 = vpop.f32.mrf.mxu0 }
 0x13c   : > { %687 = vst.msk [vmem:[%s1109_s6 + $0x48] sm:$0xf] %vm668_vm1, %v880_v34  ;;  %v878_v40 = vpack.c.bf16 %v478_v36, %v478_v36  ;;  %v489_v42 = vadd.f32 %v941_v39, %v1102_v28  ;;  %671 = vst.msk [vmem:[%s1109_s6 + $0x8] sm:$0xf] %vm668_vm1, %v864_v37  ;;  %v862_v43 = vpack.c.bf16 %v414_v38, %v414_v38 }
 0x13d   : > { %v425_v44 = vadd.f32 %v925_v41, %v1102_v28  ;;  %v480_v45 = vpop.f32.mrf.mxu1  ;;  %v416_v47 = vpop.f32.mrf.mxu0 }
 0x13e   : > { %685 = vst.msk [vmem:[%s1109_s6 + $0x40] sm:$0xf] %vm668_vm1, %v878_v40  ;;  %v881_v46 = vpack.c.bf16 %v489_v42, %v489_v42  ;;  %v481_v48 = vadd.f32 %v1102_v28, %v480_v45  ;;  %669 = vst.msk [vmem:[%s1109_s6] sm:$0xf] %vm668_vm1, %v862_v43  ;;  %v417_v50 = vadd.f32 %v1102_v28, %v416_v47 }
 0x13f   : > { %v865_v49 = vpack.c.bf16 %v425_v44, %v425_v44  ;;  %v944_v51 = vpop.f32.mrf.mxu1  ;;  %v928_v53 = vpop.f32.mrf.mxu0 }
 0x140   : > { %688 = vst.msk [vmem:[%s1109_s6 + $0x4c] sm:$0xf] %vm668_vm1, %v881_v46  ;;  %v879_v52 = vpack.c.bf16 %v481_v48, %v481_v48  ;;  %v502_v54 = vadd.f32 %v944_v51, %v1102_v28  ;;  %v863_v55 = vpack.c.bf16 %v417_v50, %v417_v50  ;;  %v438_v56 = vadd.f32 %v928_v53, %v1102_v28 }
 0x141   : > { %672 = vst.msk [vmem:[%s1109_s6 + $0xc] sm:$0xf] %vm668_vm1, %v865_v49  ;;  %v493_v57 = vpop.f32.mrf.mxu1  ;;  %v429_v59 = vpop.f32.mrf.mxu0 }
 0x142   : > { %686 = vst.msk [vmem:[%s1109_s6 + $0x44] sm:$0xf] %vm668_vm1, %v879_v52  ;;  %v884_v58 = vpack.c.bf16 %v502_v54, %v502_v54  ;;  %v494_v60 = vadd.f32 %v1102_v28, %v493_v57  ;;  %670 = vst.msk [vmem:[%s1109_s6 + $0x4] sm:$0xf] %vm668_vm1, %v863_v55  ;;  %v868_v61 = vpack.c.bf16 %v438_v56, %v438_v56 }
 0x143   : > { %v430_v62 = vadd.f32 %v1102_v28, %v429_v59  ;;  %v945_v63 = vpop.f32.mrf.mxu1  ;;  %v929_v1 = vpop.f32.mrf.mxu0 }
 0x144   : > { %691 = vst.msk [vmem:[%s1109_s6 + $0x58] sm:$0xf] %vm668_vm1, %v884_v58  ;;  %v882_v0 = vpack.c.bf16 %v494_v60, %v494_v60  ;;  %v505_v2 = vadd.f32 %v945_v63, %v1102_v28  ;;  %675 = vst.msk [vmem:[%s1109_s6 + $0x18] sm:$0xf] %vm668_vm1, %v868_v61  ;;  %v441_v4 = vadd.f32 %v929_v1, %v1102_v28 }
 0x145   : > { %v866_v3 = vpack.c.bf16 %v430_v62, %v430_v62  ;;  %v496_v5 = vpop.f32.mrf.mxu1  ;;  %v432_v7 = vpop.f32.mrf.mxu0 }
 0x146   : > { %689 = vst.msk [vmem:[%s1109_s6 + $0x50] sm:$0xf] %vm668_vm1, %v882_v0  ;;  %v885_v6 = vpack.c.bf16 %v505_v2, %v505_v2  ;;  %v497_v8 = vadd.f32 %v1102_v28, %v496_v5  ;;  %v869_v9 = vpack.c.bf16 %v441_v4, %v441_v4  ;;  %v433_v10 = vadd.f32 %v1102_v28, %v432_v7 }
 0x147   : > { %673 = vst.msk [vmem:[%s1109_s6 + $0x10] sm:$0xf] %vm668_vm1, %v866_v3  ;;  %v948_v11 = vpop.f32.mrf.mxu1  ;;  %v932_v13 = vpop.f32.mrf.mxu0 }
 0x148   : > { %692 = vst.msk [vmem:[%s1109_s6 + $0x5c] sm:$0xf] %vm668_vm1, %v885_v6  ;;  %v883_v12 = vpack.c.bf16 %v497_v8, %v497_v8  ;;  %v518_v14 = vadd.f32 %v948_v11, %v1102_v28  ;;  %676 = vst.msk [vmem:[%s1109_s6 + $0x1c] sm:$0xf] %vm668_vm1, %v869_v9  ;;  %v867_v15 = vpack.c.bf16 %v433_v10, %v433_v10 }
 0x149   : > { %v454_v16 = vadd.f32 %v932_v13, %v1102_v28  ;;  %v509_v17 = vpop.f32.mrf.mxu1  ;;  %v445_v19 = vpop.f32.mrf.mxu0 }
 0x14a   : > { %690 = vst.msk [vmem:[%s1109_s6 + $0x54] sm:$0xf] %vm668_vm1, %v883_v12  ;;  %v888_v18 = vpack.c.bf16 %v518_v14, %v518_v14  ;;  %v510_v20 = vadd.f32 %v1102_v28, %v509_v17  ;;  %674 = vst.msk [vmem:[%s1109_s6 + $0x14] sm:$0xf] %vm668_vm1, %v867_v15  ;;  %v446_v22 = vadd.f32 %v1102_v28, %v445_v19 }
 0x14b   : > { %v872_v21 = vpack.c.bf16 %v454_v16, %v454_v16  ;;  %v949_v23 = vpop.f32.mrf.mxu1  ;;  %v933_v25 = vpop.f32.mrf.mxu0 }
 0x14c   : > { %695 = vst.msk [vmem:[%s1109_s6 + $0x68] sm:$0xf] %vm668_vm1, %v888_v18  ;;  %v886_v24 = vpack.c.bf16 %v510_v20, %v510_v20  ;;  %v521_v26 = vadd.f32 %v949_v23, %v1102_v28  ;;  %v870_v27 = vpack.c.bf16 %v446_v22, %v446_v22  ;;  %v457_v29 = vadd.f32 %v933_v25, %v1102_v28 }
 0x14d   : > { %679 = vst.msk [vmem:[%s1109_s6 + $0x28] sm:$0xf] %vm668_vm1, %v872_v21  ;;  %v512_v30 = vpop.f32.mrf.mxu1  ;;  %v448_v32 = vpop.f32.mrf.mxu0 }
 0x14e   : > { %693 = vst.msk [vmem:[%s1109_s6 + $0x60] sm:$0xf] %vm668_vm1, %v886_v24  ;;  %v889_v31 = vpack.c.bf16 %v521_v26, %v521_v26  ;;  %v513_v33 = vadd.f32 %v1102_v28, %v512_v30  ;;  %677 = vst.msk [vmem:[%s1109_s6 + $0x20] sm:$0xf] %vm668_vm1, %v870_v27  ;;  %v873_v34 = vpack.c.bf16 %v457_v29, %v457_v29 }
 0x14f   : > { %v449_v35 = vadd.f32 %v1102_v28, %v448_v32  ;;  %v952_v36 = vpop.f32.mrf.mxu1  ;;  %v936_v38 = vpop.f32.mrf.mxu0 }
 0x150   : > { %696 = vst.msk [vmem:[%s1109_s6 + $0x6c] sm:$0xf] %vm668_vm1, %v889_v31  ;;  %v887_v37 = vpack.c.bf16 %v513_v33, %v513_v33  ;;  %v534_v39 = vadd.f32 %v952_v36, %v1102_v28  ;;  %680 = vst.msk [vmem:[%s1109_s6 + $0x2c] sm:$0xf] %vm668_vm1, %v873_v34  ;;  %v470_v41 = vadd.f32 %v936_v38, %v1102_v28 }
 0x151   : > { %v871_v40 = vpack.c.bf16 %v449_v35, %v449_v35  ;;  %v525_v42 = vpop.f32.mrf.mxu1  ;;  %v461_v44 = vpop.f32.mrf.mxu0 }
 0x152   : > { %694 = vst.msk [vmem:[%s1109_s6 + $0x64] sm:$0xf] %vm668_vm1, %v887_v37  ;;  %v892_v43 = vpack.c.bf16 %v534_v39, %v534_v39  ;;  %v526_v45 = vadd.f32 %v1102_v28, %v525_v42  ;;  %v876_v46 = vpack.c.bf16 %v470_v41, %v470_v41  ;;  %v462_v47 = vadd.f32 %v1102_v28, %v461_v44 }
 0x153   : > { %678 = vst.msk [vmem:[%s1109_s6 + $0x24] sm:$0xf] %vm668_vm1, %v871_v40  ;;  %v953_v48 = vpop.f32.mrf.mxu1  ;;  %v937_v50 = vpop.f32.mrf.mxu0 }
 0x154   : > { %699 = vst.msk [vmem:[%s1109_s6 + $0x78] sm:$0xf] %vm668_vm1, %v892_v43  ;;  %v890_v49 = vpack.c.bf16 %v526_v45, %v526_v45  ;;  %v537_v51 = vadd.f32 %v953_v48, %v1102_v28  ;;  %683 = vst.msk [vmem:[%s1109_s6 + $0x38] sm:$0xf] %vm668_vm1, %v876_v46  ;;  %v874_v52 = vpack.c.bf16 %v462_v47, %v462_v47 }
 0x155   : > { %v473_v53 = vadd.f32 %v937_v50, %v1102_v28  ;;  %v528_v54 = vpop.f32.mrf.mxu1  ;;  %v464_v56 = vpop.f32.mrf.mxu0 }
 0x156   : > { %697 = vst.msk [vmem:[%s1109_s6 + $0x70] sm:$0xf] %vm668_vm1, %v890_v49  ;;  %v893_v55 = vpack.c.bf16 %v537_v51, %v537_v51  ;;  %v529_v57 = vadd.f32 %v1102_v28, %v528_v54  ;;  %681 = vst.msk [vmem:[%s1109_s6 + $0x30] sm:$0xf] %vm668_vm1, %v874_v52  ;;  %v465_v59 = vadd.f32 %v1102_v28, %v464_v56 }
 0x157   : > { %v877_v58 = vpack.c.bf16 %v473_v53, %v473_v53 }
 0x158   : > { %700 = vst.msk [vmem:[%s1109_s6 + $0x7c] sm:$0xf] %vm668_vm1, %v893_v55  ;;  %v891_v60 = vpack.c.bf16 %v529_v57, %v529_v57  ;;  %v875_v61 = vpack.c.bf16 %v465_v59, %v465_v59 }
 0x159   : > { %684 = vst.msk [vmem:[%s1109_s6 + $0x3c] sm:$0xf] %vm668_vm1, %v877_v58 }
 0x15a   : > { %698 = vst.msk [vmem:[%s1109_s6 + $0x74] sm:$0xf] %vm668_vm1, %v891_v60  ;;  %682 = vst.msk [vmem:[%s1109_s6 + $0x34] sm:$0xf] %vm668_vm1, %v875_v61 }
 0x15b PF: > { %s13_s14 = sadd.s32 1, %s1025_s14   ;;  %s1219_s12 = smov %s1021_s13 }
 0x15c   : > { %p10_p5 = scmp.ge.s32.totalorder %s13_s14, 4   ;;  %s1220_s13 = smov %s1222_s15 }
 0x15e   :  { %12 = sbr.rel (!%p10_p5) target bundleno = 2 (0x2), region = 62 }

</bundles_post_ra>
